<compile_context>
chip_gen: v7x
topology: tpu7x:2x2x1
jax: 0.10.0
libtpu: 0.0.40
codegen_flags: <defaults>
</compile_context>

<pallas_src>
import functools

import jax
import jax.numpy as jnp
from jax import lax
from jax.experimental import pallas as pl
from jax.experimental.pallas import tpu as pltpu


# ----------------------------- Pallas kernels --------------------------------

def _g_conv_kernel(v_ref, wg_ref, bg_ref, out_ref, *, compute_dtype):
    """1x1x1 conv `g` over channels (channel-major, lane-dense output).

    v_ref:  (1, C, tn)   input tokens (channel-major)
    wg_ref: (Ci, C)      g.weight
    bg_ref: (Ci, 1)      g.bias
    out:    (1, Ci, tn)
    """
    v = v_ref[0]
    g = lax.dot_general(
        wg_ref[...].astype(compute_dtype), v.astype(compute_dtype),
        dimension_numbers=(((1,), (0,)), ((), ())),
        preferred_element_type=jnp.float32)                       # (Ci, tn)
    out_ref[0] = (g + bg_ref[...]).astype(out_ref.dtype)


def _attn_single_kernel(q_ref, phi_ref, gaug_ref, wfold_ref, bfold_ref, out_ref,
                        *, compute_dtype, exp_dtype):
    """Single-pass softmax attention (whole Np per step) + folded W/BN + residual.

    q_ref:    (1, C, tq)    theta_q tile AND residual tile (channel-major)
    phi_ref:  (1, C, Np)    pooled-v (full kv extent)
    gaug_ref: (1, Ci+1, Np) pooled g(v) with an appended ones-row (row Ci)
    wfold_ref:(C, Ci)       BN-folded W conv weight
    bfold_ref:(C, 1)        BN-folded bias
    out_ref:  (1, C, tq)
    """
    q_f32 = q_ref[0]                                              # (C, tq) f32

    # logits s[k, n] = sum_c phi[c, k] * q[c, n]   -> tokens stay on lanes
    s = lax.dot_general(
        phi_ref[0].astype(compute_dtype), q_f32.astype(compute_dtype),
        dimension_numbers=(((0,), (0,)), ((), ())),
        preferred_element_type=jnp.float32)                       # (Np, tq) f32

    m = jnp.max(s, axis=0, keepdims=True)                         # (1, tq) f32
    # bf16 exp on v6e/v7x (exp_dtype=bf16), f32 exp on v5e / exact path.
    e = jnp.exp((s - m).astype(exp_dtype)).astype(compute_dtype)  # (Np, tq)

    # y_aug[i, n] = sum_k g_aug[i, k] * e[k, n]; row Ci is the softmax denominator l.
    y_aug = lax.dot_general(
        gaug_ref[0].astype(compute_dtype), e,
        dimension_numbers=(((1,), (0,)), ((), ())),
        preferred_element_type=jnp.float32)                       # (Ci+1, tq) f32

    ci = y_aug.shape[0] - 1
    l = y_aug[ci:ci + 1, :]                                       # (1, tq)
    approx = jnp.dtype(compute_dtype) != jnp.dtype(jnp.float32)
    y = y_aug[:ci, :] * pl.reciprocal(l, approx=approx)           # (Ci, tq)

    wy = lax.dot_general(
        wfold_ref[...].astype(compute_dtype), y.astype(compute_dtype),
        dimension_numbers=(((1,), (0,)), ((), ())),
        preferred_element_type=jnp.float32)                       # (C, tq)
    out_ref[0] = (wy + bfold_ref[...] + q_f32).astype(out_ref.dtype)


def _attn_flash_kernel(q_ref, phi_ref, gaug_ref, wfold_ref, bfold_ref, out_ref,
                       qc_sc, m_sc, acc_sc, *, compute_dtype, exp_dtype):
    """Tiled online-softmax attention (used only when Np does not fit one kv block).

    Same operand layout as the single-pass kernel, with kv tiles of size tk.
    scratch: qc_sc (C, tq) compute_dtype — q cast hoisted out of the kv loop
             m_sc  (1, tq) f32           — running max
             acc_sc (Ci+1, tq) f32       — unnormalized y (+ denominator in row Ci)
    """
    kj = pl.program_id(2)

    @pl.when(kj == 0)
    def _():
        qc_sc[...] = q_ref[0].astype(compute_dtype)
        m_sc[...] = jnp.full(m_sc.shape, -jnp.inf, m_sc.dtype)
        acc_sc[...] = jnp.zeros(acc_sc.shape, acc_sc.dtype)

    s = lax.dot_general(
        phi_ref[0].astype(compute_dtype), qc_sc[...],
        dimension_numbers=(((0,), (0,)), ((), ())),
        preferred_element_type=jnp.float32)                       # (tk, tq) f32

    m_prev = m_sc[...]
    m_new = jnp.maximum(m_prev, jnp.max(s, axis=0, keepdims=True))  # (1, tq)
    alpha = jnp.exp(m_prev - m_new)                                 # (1, tq) f32
    e = jnp.exp((s - m_new).astype(exp_dtype)).astype(compute_dtype)

    y_aug = lax.dot_general(
        gaug_ref[0].astype(compute_dtype), e,
        dimension_numbers=(((1,), (0,)), ((), ())),
        preferred_element_type=jnp.float32)                        # (Ci+1, tq)
    acc_sc[...] = alpha * acc_sc[...] + y_aug
    m_sc[...] = m_new

    @pl.when(kj == pl.num_programs(2) - 1)
    def _():
        ci = acc_sc.shape[0] - 1
        acc = acc_sc[...]
        l = acc[ci:ci + 1, :]
        approx = jnp.dtype(compute_dtype) != jnp.dtype(jnp.float32)
        y = acc[:ci, :] * pl.reciprocal(l, approx=approx)           # (Ci, tq)
        wy = lax.dot_general(
            wfold_ref[...].astype(compute_dtype), y.astype(compute_dtype),
            dimension_numbers=(((1,), (0,)), ((), ())),
            preferred_element_type=jnp.float32)                     # (C, tq)
        out_ref[0] = (wy + bfold_ref[...] + q_ref[0]).astype(out_ref.dtype)


# ------------------------------- wrapper --------------------------------------

def _tpu_generation():
    try:
        kind = jax.devices()[0].device_kind.lower()
    except Exception:
        return 0
    for gen in (7, 6, 5, 4, 3, 2):
        if f"v{gen}" in kind:
            return gen
    return 0


def _pick_tile(n, target):
    """Largest 128-multiple divisor of n <= target; falls back to any divisor."""
    if n <= target:
        return n
    t = (min(target, n) // 128) * 128
    while t >= 128:
        if n % t == 0:
            return t
        t -= 128
    for t in range(min(target, n), 0, -1):
        if n % t == 0:
            return t
    return n


def _attn_vmem_estimate(C, Ci, tq, tk, cd_bytes, out_bytes):
    """Rough per-step VMEM bytes (double-buffered blocks + scratch + intermediates)."""
    blocks = 2 * (C * tq * 4 + C * tk * 4 + (Ci + 1) * tk * cd_bytes
                  + C * tq * out_bytes)
    scratch = (Ci + 1) * tq * 4 + tq * 4 + C * tq * cd_bytes
    interm = tk * tq * (4 + cd_bytes) + (Ci + 1) * tq * 4
    return blocks + scratch + interm


def nonlocal_block_forward(v, q, params, *, block_q=None, block_kv=None,
                           block_g=None, matmul_dtype=jnp.bfloat16,
                           exp_dtype=None, out_dtype=None):
    """v, q: (B, C, T, H, W) float32 (NCDHW, like the PyTorch module)."""
    B, C, T, H, W = v.shape
    Ci = params["w_g"].shape[0]
    assert H % 2 == 0 and W % 2 == 0, "sub_sample max-pool needs even H, W"
    H2, W2 = H // 2, W // 2
    Nq = T * H * W
    Np = T * H2 * W2

    gen = _tpu_generation()
    # Per-generation VMEM budget: v7x has only 64 MiB physical per TC.
    vmem_limit = (48 if gen >= 7 else 96) * 1024 * 1024
    vmem_budget = int(vmem_limit * 0.7)
    if exp_dtype is None:
        # bf16 EUP exists on v6e/v7x; v5e (and unknown) keeps the f32 exp path.
        exp_dtype = (jnp.bfloat16
                     if (jnp.dtype(matmul_dtype) == jnp.dtype(jnp.bfloat16)
                         and gen >= 6)
                     else jnp.float32)
    if out_dtype is None:
        out_dtype = q.dtype          # set to jnp.bfloat16 to halve the writeback
    cd_bytes = jnp.dtype(matmul_dtype).itemsize
    out_bytes = jnp.dtype(out_dtype).itemsize

    # Channel-major token layout: these reshapes are free (no HBM transpose pass).
    v_cm = v.reshape(B, C, Nq)
    q_cm = q.reshape(B, C, Nq)

    # --- kernel 1: g(v) 1x1x1 conv at full resolution (lane-dense output) -----
    tn = _pick_tile(Nq, Nq if block_g is None else block_g)   # default: full row
    wg = params["w_g"]                        # (Ci, C)
    bg = params["b_g"].reshape(Ci, 1)
    cost1 = pl.CostEstimate(
        flops=2 * B * Nq * Ci * C,
        transcendentals=0,
        bytes_accessed=4 * B * C * Nq + cd_bytes * B * Ci * Nq)
    g_full = pl.pallas_call(
        functools.partial(_g_conv_kernel, compute_dtype=matmul_dtype),
        out_shape=jax.ShapeDtypeStruct((B, Ci, Nq), matmul_dtype),
        grid=(B, Nq // tn),
        in_specs=[
            pl.BlockSpec((1, C, tn), lambda b, i: (b, 0, i)),
            pl.BlockSpec((Ci, C), lambda b, i: (0, 0)),
            pl.BlockSpec((Ci, 1), lambda b, i: (0, 0)),
        ],
        out_specs=pl.BlockSpec((1, Ci, tn), lambda b, i: (b, 0, i)),
        compiler_params=pltpu.CompilerParams(
            dimension_semantics=("parallel", "parallel"),
            vmem_limit_bytes=vmem_limit),
        cost_estimate=cost1,
    )(v_cm, wg, bg)

    # --- glue: MaxPool3d(kernel_size=(1, 2, 2)) on g(v) and on v ---------------
    # TODO(synk): fuse the (1,2,2) max-pool (and the phi pool of v) into kernel 1 via
    # stride-2 lane slices on a VMEM scratch (pl.ds(..., stride=2)); left as XLA glue
    # because the H-direction pair selection is not a single strided slice in the
    # flattened-token layout and an in-kernel relayout risks Mosaic lowering failures.
    g_pool = (g_full.reshape(B, Ci, T, H2, 2, W2, 2).max(axis=(4, 6))
              .reshape(B, Ci, Np))                                 # (B, Ci, Np)
    # Ones-row appended so the attention MXU matmul also produces the softmax denom.
    g_aug = jnp.concatenate(
        [g_pool, jnp.ones((B, 1, Np), g_pool.dtype)], axis=1)      # (B, Ci+1, Np)
    phi_pool = (v.reshape(B, C, T, H2, 2, W2, 2).max(axis=(4, 6))
                .reshape(B, C, Np))                                # (B, C, Np) f32

    # --- fold W conv + eval-mode BatchNorm into one weight/bias ----------------
    # TODO(synk): training-mode BatchNorm (batch statistics) not implemented;
    # eval-mode running stats are folded into scale/shift.
    eps = 1e-5
    bn_scale = params["bn_gamma"] / jnp.sqrt(params["bn_var"] + eps)   # (C,)
    w_fold = bn_scale[:, None] * params["w_w"]                          # (C, Ci)
    b_fold = (bn_scale * params["b_w"] + params["bn_beta"]
              - params["bn_mean"] * bn_scale).reshape(C, 1)             # (C, 1)

    # --- tile selection (per-generation, VMEM-budgeted) -------------------------
    target_q = block_q if block_q is not None else (512 if gen >= 7 else 1024)
    target_kv = block_kv if block_kv is not None else Np   # default: whole Np
    tq = _pick_tile(Nq, target_q)
    tk = _pick_tile(Np, target_kv)
    # Keep >= 2 parallel grid iterations (v7x has 2 TensorCores per chip).
    while B * (Nq // tq) < 2 and tq >= 256:
        cand = _pick_tile(Nq, tq // 2)
        if cand >= tq:
            break
        tq = cand
    # Shrink under the VMEM budget (matters at production channel counts / on v7x).
    for _ in range(16):
        if _attn_vmem_estimate(C, Ci, tq, tk, cd_bytes, out_bytes) <= vmem_budget:
            break
        if tq > 256:
            cand = _pick_tile(Nq, max(256, tq // 2))
            if cand < tq:
                tq = cand
                continue
        if tk > 512:
            cand = _pick_tile(Np, max(512, tk // 2))
            if cand < tk:
                tk = cand
                continue
        break
    n_q = Nq // tq
    n_k = Np // tk

    cost2 = pl.CostEstimate(
        flops=2 * B * Nq * (C * Np + Np * (Ci + 1) + Ci * C),
        transcendentals=B * Nq * Np,
        bytes_accessed=(4 * B * C * Nq + 4 * B * C * Np
                        + cd_bytes * B * (Ci + 1) * Np + out_bytes * B * C * Nq))

    # --- kernel 2: attention + folded W/BN + residual ---------------------------
    if n_k == 1:
        # Single-pass softmax: whole Np per q tile, no online-softmax machinery.
        z_cm = pl.pallas_call(
            functools.partial(_attn_single_kernel,
                              compute_dtype=matmul_dtype, exp_dtype=exp_dtype),
            out_shape=jax.ShapeDtypeStruct((B, C, Nq), out_dtype),
            grid=(B, n_q),
            in_specs=[
                pl.BlockSpec((1, C, tq), lambda b, qi: (b, 0, qi)),
                pl.BlockSpec((1, C, Np), lambda b, qi: (b, 0, 0)),
                pl.BlockSpec((1, Ci + 1, Np), lambda b, qi: (b, 0, 0)),
                pl.BlockSpec((C, Ci), lambda b, qi: (0, 0)),
                pl.BlockSpec((C, 1), lambda b, qi: (0, 0)),
            ],
            out_specs=pl.BlockSpec((1, C, tq), lambda b, qi: (b, 0, qi)),
            compiler_params=pltpu.CompilerParams(
                dimension_semantics=("parallel", "parallel"),
                vmem_limit_bytes=vmem_limit),
            cost_estimate=cost2,
        )(q_cm, phi_pool, g_aug, w_fold, b_fold)
    else:
        # Flash-style online softmax over kv tiles.
        z_cm = pl.pallas_call(
            functools.partial(_attn_flash_kernel,
                              compute_dtype=matmul_dtype, exp_dtype=exp_dtype),
            out_shape=jax.ShapeDtypeStruct((B, C, Nq), out_dtype),
            grid=(B, n_q, n_k),
            in_specs=[
                pl.BlockSpec((1, C, tq), lambda b, qi, kj: (b, 0, qi)),
                pl.BlockSpec((1, C, tk), lambda b, qi, kj: (b, 0, kj)),
                pl.BlockSpec((1, Ci + 1, tk), lambda b, qi, kj: (b, 0, kj)),
                pl.BlockSpec((C, Ci), lambda b, qi, kj: (0, 0)),
                pl.BlockSpec((C, 1), lambda b, qi, kj: (0, 0)),
            ],
            out_specs=pl.BlockSpec((1, C, tq), lambda b, qi, kj: (b, 0, qi)),
            scratch_shapes=[
                pltpu.VMEM((C, tq), matmul_dtype),      # hoisted q cast
                pltpu.VMEM((1, tq), jnp.float32),       # running max m
                pltpu.VMEM((Ci + 1, tq), jnp.float32),  # unnormalized y (+ denom row)
            ],
            compiler_params=pltpu.CompilerParams(
                dimension_semantics=("parallel", "parallel", "arbitrary"),
                vmem_limit_bytes=vmem_limit),
            cost_estimate=cost2,
        )(q_cm, phi_pool, g_aug, w_fold, b_fold)

    # (B, C, Nq) -> (B, C, T, H, W): free reshape, no transpose.
    return z_cm.reshape(B, C, T, H, W)


# --------------------------- pure-JAX reference --------------------------------

def nonlocal_block_reference(v, q, params):
    B, C, T, H, W = v.shape
    Ci = params["w_g"].shape[0]
    H2, W2 = H // 2, W // 2
    eps = 1e-5
    hp = jax.lax.Precision.HIGHEST

    g_conv = jnp.einsum("bcthw,jc->bjthw", v, params["w_g"], precision=hp) \
        + params["b_g"][None, :, None, None, None]
    g_pool = g_conv.reshape(B, Ci, T, H2, 2, W2, 2).max(axis=(4, 6))
    g_v = g_pool.reshape(B, Ci, -1).transpose(0, 2, 1)                  # (B, Np, Ci)

    theta_q = q.reshape(B, C, -1).transpose(0, 2, 1)                    # (B, Nq, C)
    phi_v = v.reshape(B, C, T, H2, 2, W2, 2).max(axis=(4, 6)).reshape(B, C, -1)

    f = jnp.matmul(theta_q, phi_v, precision=hp)
    p = jax.nn.softmax(f, axis=-1)
    y = jnp.matmul(p, g_v, precision=hp)                                # (B, Nq, Ci)
    y = y.transpose(0, 2, 1).reshape(B, Ci, T, H, W)

    wy = jnp.einsum("bjthw,cj->bcthw", y, params["w_w"], precision=hp) \
        + params["b_w"][None, :, None, None, None]
    wy = (wy - params["bn_mean"][None, :, None, None, None]) \
        / jnp.sqrt(params["bn_var"][None, :, None, None, None] + eps) \
        * params["bn_gamma"][None, :, None, None, None] \
        + params["bn_beta"][None, :, None, None, None]
    return wy + q


# --------------------------------- main ----------------------------------------

if __name__ == "__main__":
    # (b, c, t, h, w) -> Nq = 2048 tokens, Np = 512 pooled tokens: the q-tile grid
    # axis is exercised, and the forced-small-kv run exercises the flash path too.
    B, C, T, H, W = 2, 8, 2, 32, 32
    Ci = C // 2  # inter_channels = in_channels // 2

    key = jax.random.PRNGKey(0)
    kv_, kq_, k1, k2, k3, k4, k5, k6 = jax.random.split(key, 8)

    v = jax.random.normal(kv_, (B, C, T, H, W), dtype=jnp.float32)
    q = jax.random.normal(kq_, (B, C, T, H, W), dtype=jnp.float32)

    # Deterministic parameters (Conv3d 1x1x1 weights stored as 2-D matrices).
    # NOTE: the PyTorch __init__ zero-inits the BN affine (so z == q at init);
    # nonzero values are used here so the attention/conv path is observable.
    params = {
        "w_g": 0.1 * jax.random.normal(k1, (Ci, C), dtype=jnp.float32),
        "b_g": 0.1 * jax.random.normal(k2, (Ci,), dtype=jnp.float32),
        "w_w": 0.1 * jax.random.normal(k3, (C, Ci), dtype=jnp.float32),
        "b_w": 0.1 * jax.random.normal(k4, (C,), dtype=jnp.float32),
        "bn_gamma": 1.0 + 0.1 * jax.random.normal(k5, (C,), dtype=jnp.float32),
        "bn_beta": 0.1 * jax.random.normal(k6, (C,), dtype=jnp.float32),
        "bn_mean": jnp.zeros((C,), dtype=jnp.float32),   # running stats at init
        "bn_var": jnp.ones((C,), dtype=jnp.float32),
    }

    z_ref = nonlocal_block_reference(v, q, params)

    # 1) Exact path, single-pass softmax (f32 matmuls, exact reciprocal).
    z_f32 = jax.block_until_ready(
        nonlocal_block_forward(v, q, params, matmul_dtype=jnp.float32))
    assert z_f32.shape == (B, C, T, H, W)
    err_f32 = float(jnp.max(jnp.abs(z_f32 - z_ref)))
    assert jnp.allclose(z_f32, z_ref, atol=1e-4, rtol=1e-4), err_f32

    # 2) Exact path, forced flash (online-softmax) variant: block_kv < Np.
    z_f32_flash = jax.block_until_ready(
        nonlocal_block_forward(v, q, params, matmul_dtype=jnp.float32,
                               block_q=512, block_kv=256))
    err_flash = float(jnp.max(jnp.abs(z_f32_flash - z_ref)))
    assert jnp.allclose(z_f32_flash, z_ref, atol=1e-4, rtol=1e-4), err_flash

    # 3) Fast path: bf16 MXU operands, bf16 exp on v6e/v7x (f32 exp on v5e),
    #    approx EUP reciprocal, single-pass softmax.
    z_bf16 = jax.block_until_ready(nonlocal_block_forward(v, q, params))
    err_bf16 = float(jnp.max(jnp.abs(z_bf16 - z_ref)))
    assert jnp.allclose(z_bf16, z_ref, atol=5e-2, rtol=5e-2), err_bf16

    print("KERNEL_OK")
</pallas_src>

<mosaic_0001>
module attributes {stable_mosaic.version = 11 : i64} {
  func.func @_g_conv_kernel(%arg0: i32, %arg1: i32, %arg2: memref<1x8x2048xf32, #tpu.memory_space<vmem>>, %arg3: memref<4x8xf32, #tpu.memory_space<vmem>>, %arg4: memref<4x1xf32, #tpu.memory_space<vmem>>, %arg5: memref<1x4x2048xf32, #tpu.memory_space<vmem>>) attributes {dimension_semantics = [#tpu.dimension_semantics<parallel>, #tpu.dimension_semantics<parallel>], iteration_bounds = array<i64: 2, 1>, scalar_prefetch = 0 : i64, scratch_operands = 0 : i64, tpu.core_type = #tpu.core_type<tc>, window_params = [{transform_indices = @transform_0, window_bounds = array<i64: 1, 8, 2048>}, {pipeline_mode = #tpu.pipeline_mode<synchronous>, transform_indices = @transform_1, window_bounds = array<i64: 4, 8>}, {pipeline_mode = #tpu.pipeline_mode<synchronous>, transform_indices = @transform_2, window_bounds = array<i64: 4, 1>}, {transform_indices = @transform_3, window_bounds = array<i64: 1, 4, 2048>}]} {
    %c0 = arith.constant 0 : index
    %c0_0 = arith.constant 0 : index
    %c0_1 = arith.constant 0 : index
    %0 = vector.load %arg2[%c0, %c0_0, %c0_1] : memref<1x8x2048xf32, #tpu.memory_space<vmem>>, vector<1x8x2048xf32>
    %1 = vector.shape_cast %0 : vector<1x8x2048xf32> to vector<8x2048xf32>
    %c0_2 = arith.constant 0 : index
    %c0_3 = arith.constant 0 : index
    %2 = vector.load %arg3[%c0_2, %c0_3] : memref<4x8xf32, #tpu.memory_space<vmem>>, vector<4x8xf32>
    %cst = arith.constant dense<0.000000e+00> : vector<4x2048xf32>
    %3 = tpu.matmul %2, %1, %cst {dimension_numbers = #tpu.dot_dimension_numbers<[1], [0], [0], [1], [0, 0, 1, 1], [], []>} : vector<4x8xf32>, vector<8x2048xf32>, vector<4x2048xf32> -> vector<4x2048xf32>
    %c0_4 = arith.constant 0 : index
    %c0_5 = arith.constant 0 : index
    %4 = vector.load %arg4[%c0_4, %c0_5] : memref<4x1xf32, #tpu.memory_space<vmem>>, vector<4x1xf32>
    %5 = vector.broadcast %4 : vector<4x1xf32> to vector<4x2048xf32>
    %6 = arith.addf %3, %5 : vector<4x2048xf32>
    %c0_6 = arith.constant 0 : index
    %c0_7 = arith.constant 0 : index
    %c0_8 = arith.constant 0 : index
    %7 = vector.load %arg5[%c0_6, %c0_7, %c0_8] : memref<1x4x2048xf32, #tpu.memory_space<vmem>>, vector<1x4x2048xf32>
    %8 = vector.shape_cast %7 : vector<1x4x2048xf32> to vector<4x2048xf32>
    %9 = vector.shape_cast %6 : vector<4x2048xf32> to vector<1x4x2048xf32>
    tpu.vector_store %arg5[%c0_6, %c0_7, %c0_8], %9 {strides = array<i32>} : memref<1x4x2048xf32, #tpu.memory_space<vmem>>, vector<1x4x2048xf32>,
    return
  }
  func.func @transform_0(%arg0: i32, %arg1: i32) -> (i32, i32, i32) {
    %c0_i32 = arith.constant 0 : i32
    %c0_i32_0 = arith.constant 0 : i32
    return %arg0, %c0_i32, %arg1 : i32, i32, i32
  }
  func.func @transform_1(%arg0: i32, %arg1: i32) -> (i32, i32) {
    %c0_i32 = arith.constant 0 : i32
    %c0_i32_0 = arith.constant 0 : i32
    %c0_i32_1 = arith.constant 0 : i32
    return %c0_i32, %c0_i32_0 : i32, i32
  }
  func.func @transform_2(%arg0: i32, %arg1: i32) -> (i32, i32) {
    %c0_i32 = arith.constant 0 : i32
    %c0_i32_0 = arith.constant 0 : i32
    %c0_i32_1 = arith.constant 0 : i32
    return %c0_i32, %c0_i32_0 : i32, i32
  }
  func.func @transform_3(%arg0: i32, %arg1: i32) -> (i32, i32, i32) {
    %c0_i32 = arith.constant 0 : i32
    %c0_i32_0 = arith.constant 0 : i32
    return %arg0, %c0_i32, %arg1 : i32, i32, i32
  }
}

</mosaic_0001>

<bundles_post_ra>
// kernel: tpu_custom_call.1
= control target key start
LH: loop header
LB: loop body
LE: loop exit
PB: predicated region body
PF: predicated region fallthrough
CT: control target
= control target key end

     0   :  { %8 = vsyncpa [#allocation3], 0  ;;  %s1583_s0 = inlined_call_operand.hbm [shape: f32[2,8,2048], index: 0, kind: input, shape index: {}]   ;;  %s1584_s1 = inlined_call_operand.hbm [shape: f32[4,8], index: 1, kind: input, shape index: {}]   ;;  %s1585_s2 = inlined_call_operand.hbm [shape: f32[4,1], index: 2, kind: input, shape index: {}]   ;;  %s1586_s3 = inlined_call_operand.hbm [shape: f32[2,4,2048], index: 3, kind: output, shape index: {}]  }
   0x1   :  { %10 = vsyncpa [#allocation3 + $0x1], 0 }
   0x2   :  { %11 = vsyncpa [#allocation6], 0 }
   0x3   :  { %12 = vsyncpa [#allocation4], 0 }
   0x4   :  { %14 = vsyncpa [#allocation4 + $0x1], 0  ;;  %s1302_s12 = smov 0   ;;  %s1304_s13 = smov 0  }
   0x5   :  { %s1306_s14 = smov 0   ;;  %s1308_s15 = smov 0  }
   0x6   :  { %s1310_s16 = smov 0   ;;  %s1312_s17 = smov 0  }
   0x7 LB: > { %s987_s18 = sadd.s32 4294967295, %s1274_s17   ;;  %s988_s19 = sadd.s32 4294967294, %s1274_s17   ;;  %s1274_s17 = sphi %s1312_s17, %s20_s17   ;;  %s1270_s16 = sphi %s1310_s16, %s1609_s16   ;;  %s1266_s15 = sphi %s1308_s15, %s1608_s15   ;;  %s1262_s14 = sphi %s1306_s14, %s1607_s14   ;;  %s1258_s13 = sphi %s1304_s13, %s1606_s13   ;;  %s1254_s12 = sphi %s1302_s12, %s1605_s12  }
   0x8   : > { %p54_p0 = scmp.ne.s32.totalorder %s1258_s13, %s1254_s12  ;;  %p1336_p1 = scmp.eq.s32.totalorder %s987_s18, 0 }
   0x9   : > { %p1340_p2 = scmp.eq.s32.totalorder %s987_s18, 1  ;;  %p128_p3 = scmp.eq.s32.totalorder %s988_s19, 1 }
   0xa   : > { %s1591_s20 = scalar_select %p1336_p1, 1, 0 }
   0xb   : > { %s1592_s21 = scalar_select %p1340_p2, 1, 0 }
   0xc   : > { %p1346_p4 = por %p1336_p1, %p54_p0  ;;  %p989_p5 = scmp.ge.s32.totalorder %s1274_s17, 1 }
   0xd   : > { %p1351_p6 = por %p128_p3, %p54_p0  ;;  %p135_p7 = scmp.lt.s32.totalorder %s1274_s17, 3 }
   0xe   : > { %s1593_s22 = scalar_select %p1346_p4, 1, 0 }
   0xf   : > { %s1594_s23 = scalar_select %p1351_p6, 1, 0 }
  0x10   : > { %p1356_p8 = pnand %p989_p5, %p135_p7  ;;  %s1276_s25 = smov [#allocation5]  }
  0x11   : > { %s148_s26 = sshll.u32 %s1276_s25, 4  ;;  %s1277_s27 = smov [#allocation7]   ;;  %s149_s26 = int_to_ptr.vmem [resolvable:$true] %s148_s26 }
  0x12   : > { %s1595_s24 = scalar_select %p1356_p8, 1, 0 }
  0x13   : > { %p1028_p10 = pneg %p1356_p8  ;;  %s159_s28 = sshll.u32 %s1277_s27, 4  ;;  %s1369_s28 = int_to_ptr.vmem [resolvable:$true] %s159_s28 }
  0x14   : > { %s1102_s5 = scalar_lea.hbm %s1584_s1, 64 }
  0x15   : > { %p1365_p11 = pnand %p1028_p10, %p1336_p1  ;;  %p1103_p12 = scmp.ne.s32.totalorder %s1584_s1, %s1102_s5 }
  0x16   : > { %p1109_p5 = scmp.lt.u32.totalorder %s1102_s5, %s1584_s1 }
  0x17   : > { %p1104_p13 = pneg %p1365_p11 }
  0x19   : > { %p1105_p0 = pnand %p1104_p13, %p1103_p12 }
  0x1b   : > { %p1106_p3 = pneg %p1105_p0 }
  0x1d   : > { %p1111_p7 = pnand %p1109_p5, %p1106_p3 }
  0x1f   : > { %1114 = shalt.err (!%p1111_p7)
}
  0x20   : > { %s1115_s10 = scalar_lea.vmem %s149_s26, 64  ;;  %p1123_p1 = scmp.lt.s32.totalorder %s149_s26, %s149_s26 }
  0x21   : > { %p1116_p10 = scmp.ne.s32.totalorder %s149_s26, %s1115_s10  ;;  %p1124_p4 = scmp.lt.s32.totalorder %s1115_s10, %s1115_s10 }
  0x23   : > { %p1118_p9 = pnand %p1116_p10, %p1104_p13  ;;  %p1125_p8 = por %p1124_p4, %p1123_p1 }
  0x25   : > { %p1119_p6 = pneg %p1118_p9 }
  0x27   : > { %p1126_p2 = pnand %p1125_p8, %p1119_p6 }
  0x29   : > { %1129 = shalt.err (!%p1126_p2)
}
  0x2a   : > { %1031 = dma.hbm_to_vmem [thread:$0]  (!%p1365_p11), %s1584_s1, 64, %s149_s26, [#allocation6]  }
  0x2b   : > { %s1130_s27 = scalar_lea.hbm %s1585_s2, 64 }
  0x2c   : > { %p1131_p9 = scmp.ne.s32.totalorder %s1585_s2, %s1130_s27  ;;  %p1137_p2 = scmp.lt.u32.totalorder %s1130_s27, %s1585_s2 }
  0x2e   : > { %p1133_p1 = pnand %p1131_p9, %p1104_p13 }
  0x30   : > { %p1134_p4 = pneg %p1133_p1 }
  0x32   : > { %p1139_p6 = pnand %p1137_p2, %p1134_p4 }
  0x34   : > { %1142 = shalt.err (!%p1139_p6)
}
  0x35   : > { %s1143_s26 = scalar_lea.vmem %s1369_s28, 64  ;;  %p1151_p3 = scmp.lt.s32.totalorder %s1369_s28, %s1369_s28 }
  0x36   : > { %p1144_p8 = scmp.ne.s32.totalorder %s1369_s28, %s1143_s26  ;;  %p1152_p5 = scmp.lt.s32.totalorder %s1143_s26, %s1143_s26 }
  0x38   : > { %p1146_p12 = pnand %p1144_p8, %p1104_p13  ;;  %p1153_p7 = por %p1152_p5, %p1151_p3 }
  0x3a   : > { %p1147_p0 = pneg %p1146_p12 }
  0x3c   : > { %p1154_p10 = pnand %p1153_p7, %p1147_p0 }
  0x3e   : > { %1157 = shalt.err (!%p1154_p10)
}
  0x3f   : > { %1034 = dma.hbm_to_vmem [thread:$0]  (!%p1365_p11), %s1585_s2, 64, %s1369_s28, [#allocation6]  }
  0x40   : > { %s32_s9 = sadd.s32 1, %s1270_s16  ;;  %s41_s10 = sadd.s32 1, %s1262_s14 }
  0x41   : > { %p34_p13 = scmp.ge.s32.totalorder %s32_s9, 2  ;;  %p48_p9 = scmp.ne.s32.totalorder %s1262_s14, %s1258_s13 }
  0x42   : > { %p49_p1 = scmp.eq.s32.totalorder %s1274_s17, 0  ;;  %p1045_p4 = scmp.lt.s32.totalorder %s1274_s17, 2 }
  0x43   : > { %s1611_s9 = smov (%p34_p13, %s32_s9), 0  ;;  %p1597_p6 = scmp.ne.s32.totalorder %s1592_s21, 0 }
  0x44   : > { %p50_p2 = por %p49_p1, %p48_p9  ;;  %s36_s11 = ssub.s32 %s1270_s16, %s1611_s9 }
  0x45   : > { %p1428_p8 = por %p1597_p6, %p48_p9  ;;  %s170_s18 = sand.u32 1, %s1262_s14  }
  0x46   : > { %p39_p12 = scmp.eq.s32.totalorder %s36_s11, 0  ;;  %s993_s28 = sshll.u32 %s170_s18, 7 }
  0x47   : > { %s1014_s19 = sshll.u32 %s1270_s16, 11  ;;  %s174_s21 = scalar_lea.vmem [#allocation2], %s993_s28 }
  0x48   : > { %s1437_s25 = scalar_select %p39_p12, %s1262_s14, %s41_s10  }
  0x49   : > { %s1442_s4 = scalar_lea.hbm %s1583_s0, %s1014_s19  ;;  %s184_s5 = sshll.u32 %s174_s21, 4  ;;  %s1450_s5 = int_to_ptr.vmem [resolvable:$true] %s184_s5 }
  0x4a   : > { %p1446_p11 = pnand %p1045_p4, %p50_p2  ;;  %s171_s26 = scalar_lea.sflag [#allocation3], %s170_s18 }
  0x4b   : > { %s1158_s7 = scalar_lea.hbm %s1442_s4, 2048  ;;  %s1163_s11 = scalar_lea.hbm %s1583_s0, 4096 }
  0x4c   : > { %p1159_p0 = scmp.ne.s32.totalorder %s1442_s4, %s1158_s7  ;;  %p1160_p3 = pneg %p1446_p11 }
  0x4d   : > { %p1164_p10 = scmp.lt.u32.totalorder %s1442_s4, %s1583_s0  ;;  %p1165_p13 = scmp.lt.u32.totalorder %s1163_s11, %s1158_s7 }
  0x4e   : > { %p1161_p5 = pnand %p1160_p3, %p1159_p0  ;;  %p1167_p1 = scmp.lt.u32.totalorder %s1158_s7, %s1442_s4 }
  0x4f   : > { %p1166_p9 = por %p1165_p13, %p1164_p10 }
  0x50   : > { %p1162_p7 = pneg %p1161_p5 }
  0x51   : > { %p1168_p4 = por %p1167_p1, %p1166_p9 }
  0x53   : > { %p1169_p2 = pnand %p1168_p4, %p1162_p7 }
  0x55   : > { %1172 = shalt.err (!%p1169_p2)
}
  0x56   : > { %s1173_s18 = scalar_lea.vmem %s1450_s5, 2048  ;;  %s1278_s27 = smov [#allocation2]  }
  0x57   : > { %p1174_p6 = scmp.ne.s32.totalorder %s1450_s5, %s1173_s18  ;;  %s1178_s30 = sshll.u32 %s1278_s27, 4  ;;  %s1179_s30 = int_to_ptr.vmem [resolvable:$false] %s1178_s30 }
  0x58   : > { %s1180_s21 = scalar_lea.vmem %s1179_s30, 4096  ;;  %p1181_p5 = scmp.lt.s32.totalorder %s1450_s5, %s1179_s30 }
  0x59   : > { %p1176_p12 = pnand %p1174_p6, %p1160_p3  ;;  %p1182_p10 = scmp.lt.s32.totalorder %s1180_s21, %s1173_s18 }
  0x5b   : > { %p1177_p0 = pneg %p1176_p12  ;;  %p1183_p13 = por %p1182_p10, %p1181_p5 }
  0x5d   : > { %p1184_p9 = pnand %p1183_p13, %p1177_p0 }
  0x5f   : > { %1187 = shalt.err (!%p1184_p9)
}
  0x60   : > { %1038 = dma.hbm_to_vmem [thread:$0]  (!%p1446_p11), %s1442_s4, 2048, %s1450_s5, %s171_s26  }
  0x61   : > { %p1600_p7 = scmp.ne.s32.totalorder %s1595_s24, 0 }
  0x62   : > { %s1480_s7 = sand.u32 (!%p1600_p7), 1, %s1258_s13   ;;  %p1601_p3 = scmp.ne.s32.totalorder (!%p1600_p7), %s1593_s22, 0 }
  0x63   : > { %193 = sbr.rel (%p1600_p7) target bundleno = 358 (0x166), region = 32  ;;  %s997_s8 = sshll.u32 (!%p1600_p7), %s1480_s7, 7 }
  0x64   : > { %s196_s10 = scalar_lea.sflag (!%p1600_p7), [#allocation3], %s1480_s7  ;;  %s1484_s11 = scalar_lea.vmem (!%p1600_p7), [#allocation2], %s997_s8 }
  0x6a   : > { %1241 = dma.done.wait (%p1601_p3), %s196_s10, 2048  }
  0x6b   : > { %1243 = vsyncadd (%p1601_p3), %s196_s10, 4294965248  ;;  %p1602_p11 = scmp.ne.s32.totalorder %s1591_s20, 0 }
  0x6d   : > { %1245 = dma.done.wait (%p1602_p11), [#allocation6], 128  }
  0x6e   : > { %1247 = vsyncadd (%p1602_p11), [#allocation6], 4294967168  ;;  %v1279_v0 = vmov 0.0   ;;  %v1280_v1 = vmov 0   ;;  %v233_v2 = vld [vmem:[%s1484_s11 + $0x8] sm:$0xff]  ;;  %v235_v3 = vld [vmem:[%s1484_s11 + $0x18] sm:$0xff] }
  0x6f   : > { %323 = vmatprep.mubr.f32.mxu0 %v1279_v0  ;;  %394 = vmatprep.mubr.f32.mxu1 %v1279_v0  ;;  %v232_v4 = vld [vmem:[%s1484_s11] sm:$0xff]  ;;  %vm255_vm0 = vcmask 64512   ;;  %v234_v5 = vld [vmem:[%s1484_s11 + $0x10] sm:$0xff]  ;;  %v237_v7 = vld [vmem:[%s1484_s11 + $0x28] sm:$0xff]  ;;  %s1000_s20 = sshll.u32 %s1480_s7, 6  ;;  %s1015_s24 = sshll.u32 %s1266_s15, 10 }
  0x70   : > { %1101 = vset.pattern.permute.xlu0 %v1280_v1  ;;  %259 = vmatprep.subr.mxu0 %v233_v2  ;;  %v248_v6 = vld [vmem:[#allocation5] sm:$0xf]  ;;  %v239_v8 = vld [vmem:[%s1484_s11 + $0x38] sm:$0xff]  ;;  %v238_v10 = vld [vmem:[%s1484_s11 + $0x30] sm:$0xff]  ;;  %s1519_s22 = scalar_lea.vmem [#allocation8], %s1000_s20  ;;  %s1532_s26 = scalar_lea.hbm %s1586_s3, %s1015_s24 }
  0x71   : > { %330 = vmatprep.subr.mxu1 %v235_v3  ;;  %260 = vmatpush1.msra.mxu0 %v232_v4  ;;  %v236_v9 = vld [vmem:[%s1484_s11 + $0x20] sm:$0xff]  ;;  %v241_v11 = vld [vmem:[%s1484_s11 + $0x48] sm:$0xff]  ;;  %v243_v12 = vld [vmem:[%s1484_s11 + $0x58] sm:$0xff]  ;;  %s884_s4 = sshll.u32 %s1519_s22, 4  ;;  %s868_s15 = scalar_lea.sflag [#allocation4], %s1480_s7  ;;  %s1534_s4 = int_to_ptr.vmem [resolvable:$true] %s884_s4 }
  0x72   : > { %331 = vmatpush1.msra.mxu1 %v234_v5  ;;  %1001 = vmatmul.mubr.msk.f32.vlgmr.msra.gmra.mrb[0].mxu0 %vm255_vm0, %v248_v6  ;;  %v240_v13 = vld [vmem:[%s1484_s11 + $0x40] sm:$0xff]  ;;  %v242_v14 = vld [vmem:[%s1484_s11 + $0x50] sm:$0xff]  ;;  %v245_v15 = vld [vmem:[%s1484_s11 + $0x68] sm:$0xff]  ;;  %s1188_s28 = scalar_lea.vmem %s1534_s4, 1024  ;;  %s1281_s19 = smov [#allocation8]  }
  0x73   : > { %1002 = vmatmul.mubr.msk.f32.vlgmr.msra.gmra.mrb[0].mxu1 %vm255_vm0, %v248_v6  ;;  %401 = vmatprep.subr.mxu0 %v237_v7  ;;  %v247_v16 = vld [vmem:[%s1484_s11 + $0x78] sm:$0xff]  ;;  %v244_v17 = vld [vmem:[%s1484_s11 + $0x60] sm:$0xff]  ;;  %v246_v18 = vld [vmem:[%s1484_s11 + $0x70] sm:$0xff]  ;;  %p1189_p1 = scmp.ne.s32.totalorder %s1534_s4, %s1188_s28  ;;  %s1192_s18 = sshll.u32 %s1281_s19, 4  ;;  %s1193_s18 = int_to_ptr.vmem [resolvable:$false] %s1192_s18 }
  0x74   : > { %472 = vmatprep.subr.mxu1 %v239_v8  ;;  %402 = vmatpush1.msra.mxu0 %v236_v9  ;;  %v249_v19 = vld [vmem:[#allocation7] sm:$0xf]  ;;  %s1194_s27 = scalar_lea.vmem %s1193_s18, 2048  ;;  %p1195_p6 = scmp.lt.s32.totalorder %s1534_s4, %s1193_s18 }
  0x75   : > { %473 = vmatpush1.msra.mxu1 %v238_v10  ;;  %465 = vmatprep.mubr.f32.mxu0 %v1279_v0  ;;  %p1190_p4 = pnand %p1189_p1, %p1428_p8  ;;  %p1196_p12 = scmp.lt.s32.totalorder %s1194_s27, %s1188_s28 }
  0x76   : > { %536 = vmatprep.mubr.f32.mxu1 %v1279_v0  ;;  %1003 = vmatmul.mubr.msk.f32.vlgmr.msra.gmra.mrb[2].mxu0 %vm255_vm0, %v248_v6 }
  0x77   : > { %1004 = vmatmul.mubr.msk.f32.vlgmr.msra.gmra.mrb[2].mxu1 %vm255_vm0, %v248_v6  ;;  %543 = vmatprep.subr.mxu0 %v241_v11  ;;  %p1191_p2 = pneg %p1190_p4  ;;  %p1197_p0 = por %p1196_p12, %p1195_p6 }
  0x78   : > { %614 = vmatprep.subr.mxu1 %v243_v12  ;;  %544 = vmatpush1.msra.mxu0 %v240_v13 }
  0x79   : > { %615 = vmatpush1.msra.mxu1 %v242_v14  ;;  %607 = vmatprep.mubr.f32.mxu0 %v1279_v0  ;;  %p1198_p5 = pnand %p1197_p0, %p1191_p2 }
  0x7a   : > { %678 = vmatprep.mubr.f32.mxu1 %v1279_v0  ;;  %1005 = vmatmul.mubr.msk.f32.vlgmr.msra.gmra.mrb[4].mxu0 %vm255_vm0, %v248_v6 }
  0x7b   : > { %1006 = vmatmul.mubr.msk.f32.vlgmr.msra.gmra.mrb[4].mxu1 %vm255_vm0, %v248_v6  ;;  %685 = vmatprep.subr.mxu0 %v245_v15 }
  0x7c   : > { %756 = vmatprep.subr.mxu1 %v247_v16  ;;  %686 = vmatpush1.msra.mxu0 %v244_v17 }
  0x7d   : > { %757 = vmatpush1.msra.mxu1 %v246_v18  ;;  %749 = vmatprep.mubr.f32.mxu0 %v1279_v0 }
  0x7e   : > { %820 = vmatprep.mubr.f32.mxu1 %v1279_v0  ;;  %1007 = vmatmul.mubr.msk.f32.vlgmr.msra.gmra.mrb[6].mxu0 %vm255_vm0, %v248_v6 }
  0x7f   : > { %1008 = vmatmul.mubr.msk.f32.vlgmr.msra.gmra.mrb[6].mxu1 %vm255_vm0, %v248_v6  ;;  %252 = vperm.xlu0 %1101, %v249_v19  }
  0xfe   : > { %v253_v20 = vpop.permute.xlu0 %252 }
 0x145   : > { %v325_v21 = vpop.f32.mrb[0].mxu0 }
 0x146   : > { %v396_v22 = vpop.f32.mrb[0].mxu1  ;;  %v326_v23 = vadd.f32 %v325_v21, %v253_v20  ;;  %v327_v24 = vpop.f32.mrb[1].mxu0 }
 0x147   : > { %v397_v25 = vadd.f32 %v396_v22, %v253_v20  ;;  %v398_v26 = vpop.f32.mrb[1].mxu1  ;;  %v328_v27 = vadd.f32 %v327_v24, %v253_v20 }
 0x148   : > { %v399_v28 = vadd.f32 %v398_v26, %v253_v20 }
 0x149   : > { %v843_v29 = vcombine.low %v326_v23, %v328_v27  ;;  %v467_v31 = vpop.f32.mrb[2].mxu0 }
 0x14a   : > { %v844_v30 = vcombine.low %v397_v25, %v399_v28  ;;  %v538_v32 = vpop.f32.mrb[2].mxu1  ;;  %v468_v33 = vadd.f32 %v467_v31, %v253_v20  ;;  %v469_v35 = vpop.f32.mrb[3].mxu0 }
 0x14b   : > { %v539_v34 = vadd.f32 %v538_v32, %v253_v20  ;;  %v540_v36 = vpop.f32.mrb[3].mxu1  ;;  %859 = vst [vmem:[%s1519_s22] sm:$0xff] %v843_v29  ;;  %v470_v37 = vadd.f32 %v469_v35, %v253_v20 }
 0x14c   : > { %860 = vst [vmem:[%s1519_s22 + $0x8] sm:$0xff] %v844_v30  ;;  %v541_v38 = vadd.f32 %v540_v36, %v253_v20 }
 0x14d   : > { %v845_v39 = vcombine.low %v468_v33, %v470_v37  ;;  %v609_v41 = vpop.f32.mrb[4].mxu0 }
 0x14e   : > { %v846_v40 = vcombine.low %v539_v34, %v541_v38  ;;  %v680_v42 = vpop.f32.mrb[4].mxu1  ;;  %v610_v43 = vadd.f32 %v609_v41, %v253_v20  ;;  %v611_v45 = vpop.f32.mrb[5].mxu0 }
 0x14f   : > { %v681_v44 = vadd.f32 %v680_v42, %v253_v20  ;;  %v682_v46 = vpop.f32.mrb[5].mxu1  ;;  %861 = vst [vmem:[%s1519_s22 + $0x10] sm:$0xff] %v845_v39  ;;  %v612_v47 = vadd.f32 %v611_v45, %v253_v20 }
 0x150   : > { %862 = vst [vmem:[%s1519_s22 + $0x18] sm:$0xff] %v846_v40  ;;  %v683_v48 = vadd.f32 %v682_v46, %v253_v20 }
 0x151   : > { %v847_v49 = vcombine.low %v610_v43, %v612_v47  ;;  %v751_v51 = vpop.f32.mrb[6].mxu0 }
 0x152   : > { %v848_v50 = vcombine.low %v681_v44, %v683_v48  ;;  %v822_v52 = vpop.f32.mrb[6].mxu1  ;;  %v752_v53 = vadd.f32 %v751_v51, %v253_v20  ;;  %v753_v55 = vpop.f32.mrb[7].mxu0 }
 0x153   : > { %v823_v54 = vadd.f32 %v822_v52, %v253_v20  ;;  %v824_v56 = vpop.f32.mrb[7].mxu1  ;;  %863 = vst [vmem:[%s1519_s22 + $0x20] sm:$0xff] %v847_v49  ;;  %v754_v57 = vadd.f32 %v753_v55, %v253_v20 }
 0x154   : > { %864 = vst [vmem:[%s1519_s22 + $0x28] sm:$0xff] %v848_v50  ;;  %v825_v58 = vadd.f32 %v824_v56, %v253_v20 }
 0x155   : > { %v849_v59 = vcombine.low %v752_v53, %v754_v57 }
 0x156   : > { %v850_v60 = vcombine.low %v823_v54, %v825_v58 }
 0x157   : > { %865 = vst [vmem:[%s1519_s22 + $0x30] sm:$0xff] %v849_v59 }
 0x158   : > { %866 = vst [vmem:[%s1519_s22 + $0x38] sm:$0xff] %v850_v60 }
 0x159   : > { %1201 = shalt.err (!%p1198_p5)
}
 0x15a   : > { %s1202_s30 = scalar_lea.hbm %s1532_s26, 1024  ;;  %s1206_s8 = scalar_lea.hbm %s1586_s3, 2048 }
 0x15b   : > { %p1203_p10 = scmp.ne.s32.totalorder %s1532_s26, %s1202_s30  ;;  %p1207_p7 = scmp.lt.u32.totalorder %s1532_s26, %s1586_s3 }
 0x15c   : > { %p1208_p3 = scmp.lt.u32.totalorder %s1206_s8, %s1202_s30  ;;  %p1210_p1 = scmp.lt.u32.totalorder %s1202_s30, %s1532_s26 }
 0x15d   : > { %p1204_p13 = pnand %p1203_p10, %p1428_p8 }
 0x15e   : > { %p1209_p11 = por %p1208_p3, %p1207_p7 }
 0x15f   : > { %p1205_p9 = pneg %p1204_p13 }
 0x160   : > { %p1211_p4 = por %p1210_p1, %p1209_p11 }
 0x162   : > { %p1212_p2 = pnand %p1211_p4, %p1205_p9 }
 0x164   : > { %1215 = shalt.err (!%p1212_p2)
}
 0x165   : > { %1026 = dma.vmem_to_hbm [thread:$0]  (%p1428_p8), %s1534_s4, 1024, %s1532_s26, %s868_s15  }
 0x166 PF: > { %s896_s20 = sand.u32 1, %s1254_s12   ;;  %p1603_p6 = scmp.ne.s32.totalorder %s1594_s23, 0 }
 0x167   : > { %p1604_p12 = scmp.ge.s32.totalorder %s1274_s17, 2  ;;  %s897_s22 = scalar_lea.sflag [#allocation4], %s896_s20 }
 0x169   : > { %p1040_p0 = pnand %p1604_p12, %p1603_p6 }
 0x16b   : > { %1249 = dma.done.wait (!%p1040_p0), %s897_s22, 1024  }
 0x16c   : > { %1251 = vsyncadd (!%p1040_p0), %s897_s22, 4294966272  ;;  %s20_s17 = sadd.s32 1, %s1274_s17   ;;  %s1605_s12 = smov %s1258_s13 }
 0x16d   : > { %p17_p5 = scmp.ge.s32.totalorder %s20_s17, 4   ;;  %s1606_s13 = smov %s1262_s14 }
 0x16e   : > { %s1607_s14 = smov %s1437_s25  ;;  %s1608_s15 = smov %s1270_s16 }
 0x16f   : > { %s1609_s16 = smov %s1611_s9  ;;  %19 = sbr.rel (!%p17_p5) target bundleno = 7 (0x7), region = 85 }
 0x176   :  { %902 = vsyncpa [#allocation3], 1 }
 0x177   :  { %904 = vsyncpa [#allocation3 + $0x1], 1 }
 0x178   :  { %905 = vsyncpa [#allocation6], 1 }
 0x179   :  { %906 = vsyncpa [#allocation4], 1 }
 0x17a   :  { %908 = vsyncpa [#allocation4 + $0x1], 1 }

</bundles_post_ra>
